<compile_context>
chip_gen: v6e
topology: v6e:2x2x1
jax: 0.10.0
libtpu: 0.0.40
codegen_flags: <defaults>
</compile_context>

<pallas_src>
import functools

import jax
import jax.numpy as jnp
from jax import lax
from jax.experimental import pallas as pl
from jax.experimental.pallas import tpu as pltpu


def _sum_kernel(scores_ref, dcol_ref, drow_ref, part_ref, *,
                margin, n_rows, tm, ragged, compute_dtype):
    """max_violation=False: per-tile sublane/lane-dense partial sums."""
    i = pl.program_id(0)
    s = scores_ref[...].astype(compute_dtype)            # (tm, N)
    d1 = dcol_ref[...].astype(compute_dtype)              # (tm, 1) diag of each row
    d2 = drow_ref[...].astype(compute_dtype)              # (1, N)  diag of each col
    m = jnp.array(margin, dtype=compute_dtype)

    # No diagonal masking here: with (s - d) computed first, each diagonal entry
    # contributes exactly relu(margin) to both terms (even in bf16); the wrapper
    # removes 2*N*relu(margin) in closed form.
    cost = jnp.maximum((s - d1) + m, 0) + jnp.maximum((s - d2) + m, 0)
    cost = cost.astype(jnp.float32)

    if ragged:
        # Rows past N in the last tile read unspecified data -> zero them.
        row = i * tm + lax.broadcasted_iota(jnp.int32, (tm, 1), 0)
        cost = jnp.where(row < n_rows, cost, 0.0)

    # (tm, N) -> (tm//8, 8, N): sum over vreg groups is pure VALU adds (no XLU).
    part = cost.reshape(tm // 8, 8, -1).sum(axis=0)        # (8, N), f32
    part_ref[...] = part[None]


def _max_kernel(scores_ref, dcol_ref, drow_ref, rowsum_ref, colmax_ref, *,
                margin, n_rows, tm, ragged, compute_dtype):
    """max_violation=True: per-tile row-max partial sums + column-max partials."""
    i = pl.program_id(0)
    s = scores_ref[...].astype(compute_dtype)
    d1 = dcol_ref[...].astype(compute_dtype)
    d2 = drow_ref[...].astype(compute_dtype)
    m = jnp.array(margin, dtype=compute_dtype)
    n = s.shape[1]

    # Single select: poison the diagonal of s; both relu clamps then give 0 there.
    row = i * tm + lax.broadcasted_iota(jnp.int32, (tm, 1), 0)
    col = lax.broadcasted_iota(jnp.int32, (1, n), 1)
    s = jnp.where(row == col, jnp.array(-1e30, dtype=compute_dtype), s)

    cost_s = jnp.maximum((s - d1) + m, 0).astype(jnp.float32)
    cost_im = jnp.maximum((s - d2) + m, 0).astype(jnp.float32)
    if ragged:
        valid = row < n_rows
        cost_s = jnp.where(valid, cost_s, 0.0)     # padded rows contribute 0
        cost_im = jnp.where(valid, cost_im, 0.0)   # (safe: all costs >= 0)

    # Row max: one lane (XLU) reduce per tile, then sublane-group sum on the VALU.
    rmax = jnp.max(cost_s, axis=1, keepdims=True)                    # (tm, 1)
    rowsum_ref[...] = rmax.reshape(tm // 8, 8, 1).sum(axis=0)[None]  # (1, 8, 1)
    # Column max folded over sublane groups: pure VALU maxes; the final
    # cross-sublane / cross-tile max + column sum happen once in the wrapper.
    colmax_ref[...] = cost_im.reshape(tm // 8, 8, -1).max(axis=0)[None]  # (1, 8, N)


def _sublane_pack(dtype):
    size = jnp.dtype(dtype).itemsize
    if size == 2:
        return 16
    if size == 1:
        return 32
    return 8


def _vmem_capacity_bytes():
    try:
        return int(pltpu.get_tpu_info().vmem_capacity_bytes)
    except Exception:
        return 64 << 20          # v7x-safe fallback


def _pick_row_tile(n, in_itemsize, cdt_itemsize, pack, vmem_capacity, block_rows):
    # ~1/3 of VMEM for the double-buffered input row strip + elementwise temps.
    budget = vmem_capacity // 3
    per_row = n * (2 * in_itemsize + 5 * cdt_itemsize) + 64
    tm = budget // per_row
    if block_rows is not None:
        tm = min(tm, block_rows)
    tm = max(pack, min(int(tm), 1024))
    tm = (tm // pack) * pack
    n_floor = (n // pack) * pack
    tm = min(tm, max(n_floor, pack))     # never exceed N (ragged tail via cdiv grid)
    return tm


def contrastive_loss(scores, margin=0.0, max_violation=False, *,
                     prefer_low_precision=True, block_rows=None):
    n = scores.shape[0]
    assert scores.shape == (n, n), "scores must be a square [N, N] matrix"
    assert n >= 8, "contrastive_loss kernel requires N >= 8"

    # Tiny matrices whose sublane packing exceeds N: just widen to f32 (trivial).
    if n < _sublane_pack(scores.dtype):
        scores = scores.astype(jnp.float32)

    in_dtype = scores.dtype
    if prefer_low_precision and in_dtype == jnp.bfloat16:
        compute_dtype = jnp.bfloat16     # bf16-native VPU on v6e/v7x; accumulation stays f32
    else:
        compute_dtype = jnp.float32      # set prefer_low_precision=False on v5e

    pack = _sublane_pack(in_dtype)
    in_size = jnp.dtype(in_dtype).itemsize
    cdt_size = jnp.dtype(compute_dtype).itemsize

    vmem_cap = _vmem_capacity_bytes()
    tm = _pick_row_tile(n, in_size, cdt_size, pack, vmem_cap, block_rows)
    num_tiles = pl.cdiv(n, tm)
    ragged = (num_tiles * tm) != n

    # O(N) diagonal extraction in the wrapper; tiny side inputs in compute dtype.
    diag = jnp.diagonal(scores).astype(compute_dtype)
    diag_col = diag.reshape(n, 1)
    diag_row = diag.reshape(1, n)

    in_specs = [
        pl.BlockSpec((tm, n), lambda i: (i, 0)),   # scores row tile (streamed)
        pl.BlockSpec((tm, 1), lambda i: (i, 0)),   # diag value of each row
        pl.BlockSpec((1, n), lambda i: (0, 0)),    # diag value of each column
    ]

    vmem_needed = (2 * tm * n * in_size            # double-buffered input tile
                   + 5 * tm * n * cdt_size         # elementwise temporaries
                   + 4 * (tm + n) * cdt_size       # diag side inputs
                   + 4 * 8 * n * 4                 # partial outputs (double-buffered)
                   + (2 << 20))
    vmem_limit = int(min(max(vmem_needed, 16 << 20), int(vmem_cap * 0.85)))

    cost = pl.CostEstimate(
        flops=8 * n * n,
        transcendentals=0,
        bytes_accessed=n * n * in_size + num_tiles * 8 * n * 4 + 4 * n * cdt_size,
    )
    cparams = pltpu.CompilerParams(
        dimension_semantics=("parallel",),   # no cross-tile state -> megacore-shardable
        vmem_limit_bytes=vmem_limit,
    )

    static = dict(margin=float(margin), n_rows=n, tm=tm, ragged=ragged,
                  compute_dtype=compute_dtype)

    if max_violation:
        kernel = functools.partial(_max_kernel, **static)
        rowsum_parts, colmax_parts = pl.pallas_call(
            kernel,
            out_shape=(
                jax.ShapeDtypeStruct((num_tiles, 8, 1), jnp.float32),
                jax.ShapeDtypeStruct((num_tiles, 8, n), jnp.float32),
            ),
            grid_spec=pltpu.PrefetchScalarGridSpec(
                num_scalar_prefetch=0,
                grid=(num_tiles,),
                in_specs=in_specs,
                out_specs=(
                    pl.BlockSpec((1, 8, 1), lambda i: (i, 0, 0)),
                    pl.BlockSpec((1, 8, n), lambda i: (i, 0, 0)),
                ),
            ),
            compiler_params=cparams,
            cost_estimate=cost,
        )(scores, diag_col, diag_row)
        loss = jnp.sum(rowsum_parts) + jnp.sum(jnp.max(colmax_parts, axis=(0, 1)))
    else:
        kernel = functools.partial(_sum_kernel, **static)
        parts = pl.pallas_call(
            kernel,
            out_shape=jax.ShapeDtypeStruct((num_tiles, 8, n), jnp.float32),
            grid_spec=pltpu.PrefetchScalarGridSpec(
                num_scalar_prefetch=0,
                grid=(num_tiles,),
                in_specs=in_specs,
                out_specs=pl.BlockSpec((1, 8, n), lambda i: (i, 0, 0)),
            ),
            compiler_params=cparams,
            cost_estimate=cost,
        )(scores, diag_col, diag_row)
        # Closed-form diagonal correction: each diagonal entry contributed exactly
        # relu(margin) (in the compute dtype) to both cost terms inside the kernel.
        m_cdt = jnp.maximum(jnp.array(margin, dtype=compute_dtype), 0).astype(jnp.float32)
        loss = jnp.sum(parts) - 2.0 * n * m_cdt
    return loss


def _reference_loss(scores, margin=0.0, max_violation=False):
    # Pure-JAX reference mirroring the PyTorch forward (computed in f32).
    s = scores.astype(jnp.float32)
    n = s.shape[0]
    diag = jnp.diag(s).reshape(n, 1)
    cost_s = jnp.maximum(margin + s - diag, 0.0)
    cost_im = jnp.maximum(margin + s - diag.T, 0.0)
    eye = jnp.eye(n, dtype=bool)
    cost_s = jnp.where(eye, 0.0, cost_s)
    cost_im = jnp.where(eye, 0.0, cost_im)
    if max_violation:
        return jnp.sum(jnp.max(cost_s, axis=1)) + jnp.sum(jnp.max(cost_im, axis=0))
    return jnp.sum(cost_s) + jnp.sum(cost_im)


if __name__ == "__main__":
    key = jax.random.PRNGKey(0)
    margin = 0.2

    # (N, dtype, block_rows cap, rtol, atol):
    #   single tile f32, multi-tile + ragged f32, two-tile bf16, ragged bf16.
    configs = [
        (8, jnp.float32, None, 1e-5, 1e-3),
        (40, jnp.float32, 16, 1e-5, 1e-3),
        (32, jnp.bfloat16, 16, 2e-2, 1.0),
        (24, jnp.bfloat16, None, 2e-2, 1.0),
    ]

    for idx, (n, dtype, block_rows, rtol, atol) in enumerate(configs):
        k = jax.random.fold_in(key, idx)
        scores = jax.random.normal(k, (n, n), dtype=jnp.float32).astype(dtype)
        for max_violation in (False, True):
            loss = contrastive_loss(
                scores, margin=margin, max_violation=max_violation,
                block_rows=block_rows)
            loss = jax.block_until_ready(loss)
            ref = _reference_loss(scores, margin=margin, max_violation=max_violation)
            assert jnp.allclose(loss, ref, rtol=rtol, atol=atol), (
                n, str(dtype), max_violation, float(loss), float(ref))

    print("KERNEL_OK")
</pallas_src>

<mosaic_0001>
module attributes {stable_mosaic.version = 11 : i64} {
  func.func @_sum_kernel(%arg0: i32, %arg1: memref<8x8xf32, #tpu.memory_space<vmem>>, %arg2: memref<8x1xf32, #tpu.memory_space<vmem>>, %arg3: memref<1x8xf32, #tpu.memory_space<vmem>>, %arg4: memref<1x8x8xf32, #tpu.memory_space<vmem>>) attributes {dimension_semantics = [#tpu.dimension_semantics<parallel>], iteration_bounds = array<i64: 1>, scalar_prefetch = 0 : i64, scratch_operands = 0 : i64, tpu.core_type = #tpu.core_type<tc>, window_params = [{transform_indices = @transform_0, window_bounds = array<i64: 8, 8>}, {transform_indices = @transform_1, window_bounds = array<i64: 8, 1>}, {pipeline_mode = #tpu.pipeline_mode<synchronous>, transform_indices = @transform_2, window_bounds = array<i64: 1, 8>}, {transform_indices = @transform_3, window_bounds = array<i64: 1, 8, 8>}]} {
    %c0 = arith.constant 0 : index
    %c0_0 = arith.constant 0 : index
    %0 = vector.load %arg1[%c0, %c0_0] : memref<8x8xf32, #tpu.memory_space<vmem>>, vector<8x8xf32>
    %c0_1 = arith.constant 0 : index
    %c0_2 = arith.constant 0 : index
    %1 = vector.load %arg2[%c0_1, %c0_2] : memref<8x1xf32, #tpu.memory_space<vmem>>, vector<8x1xf32>
    %c0_3 = arith.constant 0 : index
    %c0_4 = arith.constant 0 : index
    %2 = vector.load %arg3[%c0_3, %c0_4] : memref<1x8xf32, #tpu.memory_space<vmem>>, vector<1x8xf32>
    %3 = vector.broadcast %1 : vector<8x1xf32> to vector<8x8xf32>
    %4 = arith.subf %0, %3 : vector<8x8xf32>
    %cst = arith.constant 2.000000e-01 : f32
    %5 = vector.broadcast %cst : f32 to vector<8x8xf32>
    %6 = arith.addf %4, %5 : vector<8x8xf32>
    %cst_5 = arith.constant 0.000000e+00 : f32
    %7 = vector.broadcast %cst_5 : f32 to vector<8x8xf32>
    %8 = arith.maximumf %6, %7 : vector<8x8xf32>
    %9 = vector.broadcast %2 : vector<1x8xf32> to vector<8x8xf32>
    %10 = arith.subf %0, %9 : vector<8x8xf32>
    %cst_6 = arith.constant 2.000000e-01 : f32
    %11 = vector.broadcast %cst_6 : f32 to vector<8x8xf32>
    %12 = arith.addf %10, %11 : vector<8x8xf32>
    %cst_7 = arith.constant 0.000000e+00 : f32
    %13 = vector.broadcast %cst_7 : f32 to vector<8x8xf32>
    %14 = arith.maximumf %12, %13 : vector<8x8xf32>
    %15 = arith.addf %8, %14 : vector<8x8xf32>
    %16 = vector.shape_cast %15 : vector<8x8xf32> to vector<1x8x8xf32>
    %cst_8 = arith.constant dense<0.000000e+00> : vector<8x8xf32>
    %17 = vector.multi_reduction <add>, %16, %cst_8 [0] : vector<1x8x8xf32> to vector<8x8xf32>
    %18 = vector.shape_cast %17 : vector<8x8xf32> to vector<1x8x8xf32>
    %c0_9 = arith.constant 0 : index
    %c0_10 = arith.constant 0 : index
    %c0_11 = arith.constant 0 : index
    %19 = vector.load %arg4[%c0_9, %c0_10, %c0_11] : memref<1x8x8xf32, #tpu.memory_space<vmem>>, vector<1x8x8xf32>
    tpu.vector_store %arg4[%c0_9, %c0_10, %c0_11], %18 {strides = array<i32>} : memref<1x8x8xf32, #tpu.memory_space<vmem>>, vector<1x8x8xf32>,
    return
  }
  func.func @transform_0(%arg0: i32) -> (i32, i32) {
    %c0_i32 = arith.constant 0 : i32
    %c0_i32_0 = arith.constant 0 : i32
    return %arg0, %c0_i32 : i32, i32
  }
  func.func @transform_1(%arg0: i32) -> (i32, i32) {
    %c0_i32 = arith.constant 0 : i32
    %c0_i32_0 = arith.constant 0 : i32
    return %arg0, %c0_i32 : i32, i32
  }
  func.func @transform_2(%arg0: i32) -> (i32, i32) {
    %c0_i32 = arith.constant 0 : i32
    %c0_i32_0 = arith.constant 0 : i32
    %c0_i32_1 = arith.constant 0 : i32
    return %c0_i32, %c0_i32_0 : i32, i32
  }
  func.func @transform_3(%arg0: i32) -> (i32, i32, i32) {
    %c0_i32 = arith.constant 0 : i32
    %c0_i32_0 = arith.constant 0 : i32
    %c0_i32_1 = arith.constant 0 : i32
    return %arg0, %c0_i32, %c0_i32_0 : i32, i32, i32
  }
}

</mosaic_0001>

<bundles_post_ra>
// kernel: tpu_custom_call.1
= control target key start
LH: loop header
LB: loop body
LE: loop exit
PB: predicated region body
PF: predicated region fallthrough
CT: control target
= control target key end

     0   :  { %v79_v1 = vmov 0   ;;  %s113_s0 = inlined_call_operand.vmem [shape: f32[8,8], index: 0, kind: input, shape index: {}]   ;;  %s114_s1 = inlined_call_operand.vmem [shape: f32[8,1], index: 1, kind: input, shape index: {}]   ;;  %s115_s2 = inlined_call_operand.vmem [shape: f32[1,8], index: 2, kind: input, shape index: {}]   ;;  %s116_s3 = inlined_call_operand.hbm [shape: f32[1,8,8], index: 3, kind: output, shape index: {}]  }
   0x1   :  { %v16_v0 = vld [vmem:[%s114_s1] sm:$0xff]  ;;  %56 = vset.pattern.permute.xlu0 %v79_v1 }
   0x2   :  { %8 = vsyncpa [#allocation3], 0  ;;  %20 = vperm.xlu0 %56, %v16_v0   ;;  %v53_v2 = vld [vmem:[%s115_s2] ss:$0 sm:$0xff]  ;;  %s80_s18 = smov [#allocation2]   ;;  %vm37_vm0 = vcmask 64512  }
   0x3   :  { %v15_v3 = vld [vmem:[%s113_s0] sm:$0xff]  ;;  %s45_s1 = sshll.u32 %s80_s18, 4  ;;  %s46_s1 = int_to_ptr.vmem [resolvable:$true] %s45_s1 }
   0x4   :  { %v32_v4 = vsub.f32 %v15_v3, %v53_v2  ;;  %s57_s19 = scalar_lea.vmem %s46_s1, 128  ;;  %p62_p1 = scmp.lt.s32.totalorder %s46_s1, %s46_s1 }
   0x5   :  { %p58_p0 = scmp.ne.s32.totalorder %s46_s1, %s57_s19  ;;  %p63_p2 = scmp.lt.s32.totalorder %s57_s19, %s57_s19 }
   0x6   :  { %v33_v5 = vadd.f32 0.2, %v32_v4 }
   0x7   :  { %p64_p3 = por %p63_p2, %p62_p1 }
   0x8   :  { %v34_v9 = vmax.f32 %v33_v5, 0.0 }
   0x9   :  { %p65_p4 = pnand %p64_p3, %p58_p0 }
  0x7d   :  { %v21_v6 = vpop.permute.xlu0 %20 }
  0x7e   :  { %v23_v7 = vsub.f32 %v15_v3, %v21_v6 }
  0x80   :  { %v24_v8 = vadd.f32 0.2, %v23_v7 }
  0x82   :  { %v25_v10 = vmax.f32 %v24_v8, 0.0 }
  0x84   :  { %v35_v11 = vadd.f32 %v34_v9, %v25_v10 }
  0x86   :  { %38 = vst.msk [vmem:[#allocation2] sm:$0xff] %vm37_vm0, %v35_v11 }
  0x87   :  { %68 = shalt.err (!%p65_p4)
}
  0x88   :  { %48 = dma.vmem_to_hbm [thread:$0]  %s46_s1, 128, %s116_s3, [#allocation3]  }
  0x89   :  { %77 = dma.done.wait [#allocation3], 128  }
  0x8a   :  { %78 = vsyncadd [#allocation3], 4294967168 }
  0x8b   :  { %52 = vsyncpa [#allocation3], 1 }

</bundles_post_ra>
